<compile_context>
chip_gen: v7x
topology: tpu7x:2x2x1
jax: 0.10.0
libtpu: 0.0.40
codegen_flags: <defaults>
</compile_context>

<pallas_src>
import jax
import jax.numpy as jnp
from jax.experimental import pallas as pl
from jax.experimental.pallas import tpu as pltpu

BN_EPS = 1e-5
_F = 16         # feature width
_OUT = 5        # logical output width
_OUT_PAD = 8    # last layer zero-padded to a sublane multiple
_WROWS = 3 * _F + _OUT_PAD   # 56 packed weight rows


def _jsc_kernel(x_ref, w_ref, c_ref, o_ref):
    # x_ref: (TN, 16) natural batch-major tile (batch on sublanes).
    # w_ref: (56, 16) packed weights: [diag(bn_scale); w1; w2; w3 padded to 8].
    # c_ref: (16, 8)  packed columns: [bn_shift | b1 | b2 | b3 padded | 0...].
    # o_ref: (8, TN)  batch-on-lanes output tile (rows 5..7 are zero padding).

    # Folded BatchNorm scale + batch->lane transpose fused into one MXU op:
    #   h[f, n] = bn_scale[f] * x[n, f]      (= diag(scale) @ x^T)
    h = jnp.einsum("of,nf->on", w_ref[0:16, :], x_ref[...],
                   preferred_element_type=jnp.float32)            # (16, TN)
    h = jnp.maximum(h + c_ref[:, 0:1], 0.0)                       # BN shift + ReLU

    # Linear(16,16) + ReLU   (weights in PyTorch (out, in) layout -> W @ h)
    h = jnp.dot(w_ref[16:32, :], h, preferred_element_type=jnp.float32)
    h = jnp.maximum(h + c_ref[:, 1:2], 0.0)

    # Linear(16,16) + ReLU
    h = jnp.dot(w_ref[32:48, :], h, preferred_element_type=jnp.float32)
    h = jnp.maximum(h + c_ref[:, 2:3], 0.0)

    # Linear(16,5) (zero-padded to 8 output rows) + ReLU
    h = jnp.dot(w_ref[48:56, :], h, preferred_element_type=jnp.float32)   # (8, TN)
    h = jnp.maximum(h + c_ref[0:8, 3:4], 0.0)

    # Fully (8,128)-aligned, lane-dense store of the padded output tile.
    o_ref[...] = h.astype(o_ref.dtype)


def _round_up(a, b):
    return ((a + b - 1) // b) * b


def _cdiv(a, b):
    return (a + b - 1) // b


def jsc_three_linear_layers(x, params, *, max_tile=16 * 1024):
    """x: (N, 16) float32.  params: dict of jnp arrays.  Returns (N, 5) float32."""
    n = x.shape[0]
    x = x.astype(jnp.float32)

    # ---- fold BatchNorm (inference semantics) and pack parameters ----------
    scale = (params["gamma"] * jax.lax.rsqrt(params["running_var"] + BN_EPS)
             ).astype(jnp.float32)
    shift = (params["beta"] - params["running_mean"] * scale).astype(jnp.float32)

    wstack = jnp.zeros((_WROWS, _F), jnp.float32)
    wstack = wstack.at[0:16].set(jnp.diag(scale))                   # BN scale
    wstack = wstack.at[16:32].set(params["w1"].astype(jnp.float32))
    wstack = wstack.at[32:48].set(params["w2"].astype(jnp.float32))
    wstack = wstack.at[48:48 + _OUT].set(params["w3"].astype(jnp.float32))

    cstack = jnp.zeros((_F, 8), jnp.float32)
    cstack = cstack.at[:, 0].set(shift)
    cstack = cstack.at[:, 1].set(params["b1"].astype(jnp.float32))
    cstack = cstack.at[:, 2].set(params["b2"].astype(jnp.float32))
    cstack = cstack.at[0:_OUT, 3].set(params["b3"].astype(jnp.float32))

    # ---- batch tiling: batch ends up on the 128-wide lane axis in-kernel ----
    if n <= 128:
        tn = n                                   # single full-extent block
    else:
        # >= 2 grid steps when possible (v7x: 2 TensorCores), tn multiple of 128,
        # capped so double-buffered (tn,16) x tiles + intermediates fit in VMEM.
        tn = min(max_tile, max(128, _round_up(_cdiv(n, 2), 128)))
    grid = (_cdiv(n, tn),)

    param_bytes = (_WROWS * _F + _F * 8) * 4
    cost = pl.CostEstimate(
        flops=2 * n * _F * (3 * _F + _OUT_PAD) + 8 * n * _F,
        transcendentals=0,
        bytes_accessed=n * (_F + _OUT_PAD) * 4 + param_bytes,
    )

    out_t = pl.pallas_call(
        _jsc_kernel,
        out_shape=jax.ShapeDtypeStruct((_OUT_PAD, n), jnp.float32),
        grid=grid,
        in_specs=[
            pl.BlockSpec((tn, _F), lambda i: (i, 0)),        # x tile (pipelined)
            pl.BlockSpec((_WROWS, _F), lambda i: (0, 0)),    # weights (resident)
            pl.BlockSpec((_F, 8), lambda i: (0, 0)),         # columns (resident)
        ],
        out_specs=pl.BlockSpec((_OUT_PAD, tn), lambda i: (0, i)),  # lane-dense
        compiler_params=pltpu.CompilerParams(
            dimension_semantics=("parallel",),
            vmem_limit_bytes=40 * 1024 * 1024,
        ),
        cost_estimate=cost,
    )(x, wstack, cstack)

    # Back to the PyTorch (N, 5) interface (accepted extra pass; consumers that
    # can take the (8, N) batch-on-lanes layout should use out_t directly).
    return out_t[:_OUT, :].T


def _reference(x, params):
    """Pure-JAX reference of the same forward, for a sanity check."""
    inv = jax.lax.rsqrt(params["running_var"] + BN_EPS)
    h = (x - params["running_mean"]) * inv * params["gamma"] + params["beta"]
    h = jnp.maximum(h, 0.0)
    h = jnp.maximum(h @ params["w1"].T + params["b1"], 0.0)
    h = jnp.maximum(h @ params["w2"].T + params["b2"], 0.0)
    h = jnp.maximum(h @ params["w3"].T + params["b3"], 0.0)
    return h


if __name__ == "__main__":
    key = jax.random.PRNGKey(0)
    keys = jax.random.split(key, 11)

    # Deterministic synthetic parameters (shapes from the module's __init__).
    # TODO(synk): training-mode BatchNorm1d (batch statistics + running-stat
    # updates) is not implemented; the kernel folds eval-mode running stats.
    params = {
        "gamma": 1.0 + 0.1 * jax.random.normal(keys[1], (16,), jnp.float32),
        "beta": 0.1 * jax.random.normal(keys[2], (16,), jnp.float32),
        "running_mean": 0.1 * jax.random.normal(keys[3], (16,), jnp.float32),
        "running_var": 1.0 + 0.1 * jax.random.uniform(keys[4], (16,), jnp.float32),
        # Linear(16,16), Linear(16,16), Linear(16,5) in PyTorch (out,in) layout
        "w1": jax.random.normal(keys[5], (16, 16), jnp.float32) * 0.25,
        "b1": 0.1 * jax.random.normal(keys[6], (16,), jnp.float32),
        "w2": jax.random.normal(keys[7], (16, 16), jnp.float32) * 0.25,
        "b2": 0.1 * jax.random.normal(keys[8], (16,), jnp.float32),
        "w3": jax.random.normal(keys[9], (5, 16), jnp.float32) * 0.25,
        "b3": jnp.linspace(-0.1, 0.1, 5, dtype=jnp.float32),
    }

    # Primary small test (batch = 8): single full-extent block.
    x_small = jax.random.normal(keys[0], (8, 16), dtype=jnp.float32)
    out = jax.block_until_ready(jsc_three_linear_layers(x_small, params))
    ref = _reference(x_small, params)
    assert out.shape == (8, 5)
    assert jnp.allclose(out, ref, atol=1e-4, rtol=1e-4), "mismatch vs reference (small)"

    # Second test: multi-step grid + ragged last block (no zero-pad copy).
    x_big = jax.random.normal(keys[10], (300, 16), dtype=jnp.float32)
    out_big = jax.block_until_ready(
        jsc_three_linear_layers(x_big, params, max_tile=128))
    ref_big = _reference(x_big, params)
    assert out_big.shape == (300, 5)
    assert jnp.allclose(out_big, ref_big, atol=1e-4, rtol=1e-4), "mismatch vs reference (tiled)"

    print("KERNEL_OK")
</pallas_src>

<mosaic_0001>
module attributes {stable_mosaic.version = 11 : i64} {
  func.func @_jsc_kernel(%arg0: i32, %arg1: memref<8x16xf32, #tpu.memory_space<vmem>>, %arg2: memref<56x16xf32, #tpu.memory_space<vmem>>, %arg3: memref<16x8xf32, #tpu.memory_space<vmem>>, %arg4: memref<8x8xf32, #tpu.memory_space<vmem>>) attributes {dimension_semantics = [#tpu.dimension_semantics<parallel>], iteration_bounds = array<i64: 1>, scalar_prefetch = 0 : i64, scratch_operands = 0 : i64, tpu.core_type = #tpu.core_type<tc>, window_params = [{transform_indices = @transform_0, window_bounds = array<i64: 8, 16>}, {pipeline_mode = #tpu.pipeline_mode<synchronous>, transform_indices = @transform_1, window_bounds = array<i64: 56, 16>}, {pipeline_mode = #tpu.pipeline_mode<synchronous>, transform_indices = @transform_2, window_bounds = array<i64: 16, 8>}, {transform_indices = @transform_3, window_bounds = array<i64: 8, 8>}]} {
    %c0 = arith.constant 0 : index
    %c0_0 = arith.constant 0 : index
    %0 = vector.load %arg2[%c0, %c0_0] : memref<56x16xf32, #tpu.memory_space<vmem>>, vector<16x16xf32>
    %c0_1 = arith.constant 0 : index
    %c0_2 = arith.constant 0 : index
    %1 = vector.load %arg1[%c0_1, %c0_2] : memref<8x16xf32, #tpu.memory_space<vmem>>, vector<8x16xf32>
    "tpu.trace_start"() <{level = 10 : i32, message = "of,nf->on"}> : () -> ()
    %cst = arith.constant dense<0.000000e+00> : vector<16x8xf32>
    %2 = tpu.matmul %0, %1, %cst {dimension_numbers = #tpu.dot_dimension_numbers<[1], [1], [0], [0], [0, 0, 1, 0], [], []>} : vector<16x16xf32>, vector<8x16xf32>, vector<16x8xf32> -> vector<16x8xf32>
    "tpu.trace_stop"() : () -> ()
    %c0_3 = arith.constant 0 : index
    %c0_4 = arith.constant 0 : index
    %3 = vector.load %arg3[%c0_3, %c0_4] : memref<16x8xf32, #tpu.memory_space<vmem>>, vector<16x1xf32>
    %4 = vector.broadcast %3 : vector<16x1xf32> to vector<16x8xf32>
    %5 = arith.addf %2, %4 : vector<16x8xf32>
    %cst_5 = arith.constant 0.000000e+00 : f32
    %6 = vector.broadcast %cst_5 : f32 to vector<16x8xf32>
    %7 = arith.maximumf %5, %6 : vector<16x8xf32>
    %c16 = arith.constant 16 : index
    %c0_6 = arith.constant 0 : index
    %8 = vector.load %arg2[%c16, %c0_6] : memref<56x16xf32, #tpu.memory_space<vmem>>, vector<16x16xf32>
    %cst_7 = arith.constant dense<0.000000e+00> : vector<16x8xf32>
    %9 = tpu.matmul %8, %7, %cst_7 {dimension_numbers = #tpu.dot_dimension_numbers<[1], [0], [0], [1], [0, 0, 1, 1], [], []>} : vector<16x16xf32>, vector<16x8xf32>, vector<16x8xf32> -> vector<16x8xf32>
    %c0_8 = arith.constant 0 : index
    %c1 = arith.constant 1 : index
    %10 = vector.load %arg3[%c0_8, %c1] : memref<16x8xf32, #tpu.memory_space<vmem>>, vector<16x1xf32>
    %11 = vector.broadcast %10 : vector<16x1xf32> to vector<16x8xf32>
    %12 = arith.addf %9, %11 : vector<16x8xf32>
    %cst_9 = arith.constant 0.000000e+00 : f32
    %13 = vector.broadcast %cst_9 : f32 to vector<16x8xf32>
    %14 = arith.maximumf %12, %13 : vector<16x8xf32>
    %c32 = arith.constant 32 : index
    %c0_10 = arith.constant 0 : index
    %15 = vector.load %arg2[%c32, %c0_10] : memref<56x16xf32, #tpu.memory_space<vmem>>, vector<16x16xf32>
    %cst_11 = arith.constant dense<0.000000e+00> : vector<16x8xf32>
    %16 = tpu.matmul %15, %14, %cst_11 {dimension_numbers = #tpu.dot_dimension_numbers<[1], [0], [0], [1], [0, 0, 1, 1], [], []>} : vector<16x16xf32>, vector<16x8xf32>, vector<16x8xf32> -> vector<16x8xf32>
    %c0_12 = arith.constant 0 : index
    %c2 = arith.constant 2 : index
    %17 = vector.load %arg3[%c0_12, %c2] : memref<16x8xf32, #tpu.memory_space<vmem>>, vector<16x1xf32>
    %18 = vector.broadcast %17 : vector<16x1xf32> to vector<16x8xf32>
    %19 = arith.addf %16, %18 : vector<16x8xf32>
    %cst_13 = arith.constant 0.000000e+00 : f32
    %20 = vector.broadcast %cst_13 : f32 to vector<16x8xf32>
    %21 = arith.maximumf %19, %20 : vector<16x8xf32>
    %c48 = arith.constant 48 : index
    %c0_14 = arith.constant 0 : index
    %22 = vector.load %arg2[%c48, %c0_14] : memref<56x16xf32, #tpu.memory_space<vmem>>, vector<8x16xf32>
    %cst_15 = arith.constant dense<0.000000e+00> : vector<8x8xf32>
    %23 = tpu.matmul %22, %21, %cst_15 {dimension_numbers = #tpu.dot_dimension_numbers<[1], [0], [0], [1], [0, 0, 1, 1], [], []>} : vector<8x16xf32>, vector<16x8xf32>, vector<8x8xf32> -> vector<8x8xf32>
    %c0_16 = arith.constant 0 : index
    %c3 = arith.constant 3 : index
    %24 = vector.load %arg3[%c0_16, %c3] : memref<16x8xf32, #tpu.memory_space<vmem>>, vector<8x1xf32>
    %25 = vector.broadcast %24 : vector<8x1xf32> to vector<8x8xf32>
    %26 = arith.addf %23, %25 : vector<8x8xf32>
    %cst_17 = arith.constant 0.000000e+00 : f32
    %27 = vector.broadcast %cst_17 : f32 to vector<8x8xf32>
    %28 = arith.maximumf %26, %27 : vector<8x8xf32>
    %c0_18 = arith.constant 0 : index
    %c0_19 = arith.constant 0 : index
    %29 = vector.load %arg4[%c0_18, %c0_19] : memref<8x8xf32, #tpu.memory_space<vmem>>, vector<8x8xf32>
    tpu.vector_store %arg4[%c0_18, %c0_19], %28 {strides = array<i32>} : memref<8x8xf32, #tpu.memory_space<vmem>>, vector<8x8xf32>,
    return
  }
  func.func @transform_0(%arg0: i32) -> (i32, i32) {
    %c0_i32 = arith.constant 0 : i32
    %c0_i32_0 = arith.constant 0 : i32
    return %arg0, %c0_i32 : i32, i32
  }
  func.func @transform_1(%arg0: i32) -> (i32, i32) {
    %c0_i32 = arith.constant 0 : i32
    %c0_i32_0 = arith.constant 0 : i32
    %c0_i32_1 = arith.constant 0 : i32
    return %c0_i32, %c0_i32_0 : i32, i32
  }
  func.func @transform_2(%arg0: i32) -> (i32, i32) {
    %c0_i32 = arith.constant 0 : i32
    %c0_i32_0 = arith.constant 0 : i32
    %c0_i32_1 = arith.constant 0 : i32
    return %c0_i32, %c0_i32_0 : i32, i32
  }
  func.func @transform_3(%arg0: i32) -> (i32, i32) {
    %c0_i32 = arith.constant 0 : i32
    %c0_i32_0 = arith.constant 0 : i32
    return %c0_i32, %arg0 : i32, i32
  }
}

</mosaic_0001>

<bundles_post_ra>
// kernel: tpu_custom_call.1
= control target key start
LH: loop header
LB: loop body
LE: loop exit
PB: predicated region body
PF: predicated region fallthrough
CT: control target
= control target key end

     0   :  { %vm30_vm0 = vcmask 130048   ;;  %s576_s0 = inlined_call_operand.vmem [shape: f32[8,16], index: 0, kind: input, shape index: {}]   ;;  %s577_s1 = inlined_call_operand.vmem [shape: f32[56,16], index: 1, kind: input, shape index: {}]   ;;  %s578_s2 = inlined_call_operand.vmem [shape: f32[16,8], index: 2, kind: input, shape index: {}]   ;;  %s579_s3 = inlined_call_operand.hbm [shape: f32[8,8], index: 3, kind: output, shape index: {}]  }
   0x1   :  { %v17_v0 = vld [vmem:[%s576_s0] sm:$0xff] }
   0x2   :  { %v15_v1 = vld [vmem:[%s577_s1] sm:$0xff]  ;;  %422 = vmatprep.subr.msk.mxu0 %vm30_vm0, %v17_v0 }
   0x3   :  { %424 = vmatprep.mubr.msk.f32.mxu0 %vm30_vm0, %v15_v1  ;;  %v18_v2 = vld [vmem:[%s578_s2] sm:$0xff] }
   0x4   :  { %8 = vsyncpa [#allocation3], 0  ;;  %423 = vmatpush3.xpose.msk.msra.mxu0 %vm30_vm0, %v17_v0  ;;  %v16_v3 = vld [vmem:[%s577_s1 + $0x8] sm:$0xff]  ;;  %v497_v4 = vmov 0   ;;  %v117_v6 = vld [vmem:[%s577_s1 + $0x10] sm:$0xff]  ;;  %v498_v7 = vmov 1  }
   0x5   :  { %467 = vset.pattern.permute.xlu0 %v497_v4  ;;  %v19_v5 = vld [vmem:[%s578_s2 + $0x8] sm:$0xff]  ;;  %431 = vmatprep.mubr.msk.f32.mxu1 %vm30_vm0, %v117_v6  ;;  %v118_v17 = vld [vmem:[%s577_s1 + $0x18] sm:$0xff]  ;;  %v210_v18 = vld [vmem:[%s577_s1 + $0x20] sm:$0xff]  ;;  %v499_v19 = vmov 2   ;;  %v500_v30 = vmov 0.0|0.0   ;;  %vm501_vm1 = vmmov 0  }
   0x6   :  { %22 = vperm.xlu0 %467, %v18_v2   ;;  %468 = vset.pattern.permute.xlu1 %v498_v7  ;;  %v211_v29 = vld [vmem:[%s577_s1 + $0x28] sm:$0xff]  ;;  %v502_v31 = vmov 0.0   ;;  %v503_v32 = vmov 3   ;;  %v303_v42 = vld [vmem:[%s577_s1 + $0x30] sm:$0xff]  ;;  %s504_s30 = smov [#allocation2]   ;;  %vm384_vm2 = vcmask 64512  }
   0x7   :  { %425 = vmatmul.mubr.msk.f32.vlgmr.msra.gmra.mrb[0].mxu0 %vm30_vm0, %v16_v3  ;;  %120 = vperm.xlu1 %468, %v18_v2   ;;  %s392_s4 = sshll.u32 %s504_s30, 4  ;;  %s393_s4 = int_to_ptr.vmem [resolvable:$true] %s392_s4 }
   0x8   :  { %438 = vmatprep.mubr.msk.f32.mxu0 %vm30_vm0, %v210_v18  ;;  %s473_s5 = scalar_lea.vmem %s393_s4, 128  ;;  %p478_p1 = scmp.lt.s32.totalorder %s393_s4, %s393_s4 }
   0x9   :  { %p474_p0 = scmp.ne.s32.totalorder %s393_s4, %s473_s5  ;;  %p479_p2 = scmp.lt.s32.totalorder %s473_s5, %s473_s5 }
   0xa   :  { %27 = vperm.xlu0 %467, %v19_v5  }
   0xb   :  { %124 = vperm.xlu1 %468, %v19_v5   ;;  %p480_p3 = por %p479_p2, %p478_p1 }
   0xd   :  { %p481_p4 = pnand %p480_p3, %p474_p0 }
   0xe   :  { %469 = vset.pattern.permute.xlu0 %v499_v19 }
   0xf   :  { %470 = vset.pattern.permute.xlu1 %v499_v19  ;;  %213 = vperm.xlu0 %469, %v18_v2  }
  0x10   :  { %217 = vperm.xlu1 %470, %v19_v5  }
  0x13   :  { %472 = vset.pattern.permute.xlu0 %v503_v32 }
  0x14   :  { %471 = vset.pattern.permute.xlu1 %v503_v32 }
  0x15   :  { %307 = vperm.xlu1 %471, %v18_v2  }
  0x85   :  { %v23_v8 = vpop.permute.xlu0 %22 }
  0x86   :  { %v121_v20 = vpop.permute.xlu1 %120 }
  0x89   :  { %v28_v9 = vpop.permute.xlu0 %27 }
  0x8a   :  { %v125_v21 = vpop.permute.xlu1 %124 }
  0x8e   :  { %v214_v34 = vpop.permute.xlu0 %213 }
  0x8f   :  { %v218_v33 = vpop.permute.xlu1 %217 }
  0x94   :  { %v308_v43 = vpop.permute.xlu1 %307 }
  0xda   :  { %v426_v10 = vpop.f32.mrb[0].mxu0 }
  0xdb   :  { %v112_v11 = vadd.f32 %v426_v10, %v28_v9  ;;  %v106_v12 = vpop.f32.mrb[1].mxu0 }
  0xdc   :  { %v107_v13 = vadd.f32 %v106_v12, %v23_v8 }
  0xdd   :  { %v116_v14 = vmax.f32 %v112_v11, 0.0 }
  0xde   :  { %v115_v15 = vmax.f32 %v107_v13, 0.0 }
  0xe0   :  { %v448_v16 = vpack.c.bf16 %v116_v14, %v115_v15 }
  0xe2   :  { %449 = vmatprep.subr.bf16.mxu1 %v448_v16 }
  0xe3   :  { %451 = vmatpush3.bf16.msra.mxu1 %v448_v16 }
  0xe4   :  { %456 = vmatprep.subr.bf16.mxu1 %v500_v30 }
  0xe6   :  { %432 = vmatmul.mubr.msk.f32.vlgmr.msra.gmra.mrb[0].mxu1 %vm30_vm0, %v118_v17 }
  0xe7   :  { %445 = vmatprep.mubr.msk.f32.mxu1 %vm501_vm1, %v502_v31 }
 0x1b9   :  { %v433_v22 = vpop.f32.mrb[0].mxu1 }
 0x1ba   :  { %v205_v23 = vadd.f32 %v433_v22, %v125_v21  ;;  %v199_v24 = vpop.f32.mrb[1].mxu1 }
 0x1bb   :  { %v200_v25 = vadd.f32 %v199_v24, %v121_v20 }
 0x1bc   :  { %v209_v26 = vmax.f32 %v205_v23, 0.0 }
 0x1bd   :  { %v208_v27 = vmax.f32 %v200_v25, 0.0 }
 0x1bf   :  { %v452_v28 = vpack.c.bf16 %v209_v26, %v208_v27 }
 0x1c1   :  { %453 = vmatprep.subr.bf16.mxu0 %v452_v28 }
 0x1c2   :  { %455 = vmatpush3.bf16.msra.mxu0 %v452_v28 }
 0x1c5   :  { %439 = vmatmul.mubr.msk.f32.vlgmr.msra.gmra.mrb[2].mxu0 %vm30_vm0, %v211_v29 }
 0x298   :  { %v440_v35 = vpop.f32.mrb[2].mxu0 }
 0x299   :  { %v298_v36 = vadd.f32 %v440_v35, %v218_v33  ;;  %v292_v37 = vpop.f32.mrb[3].mxu0 }
 0x29a   :  { %v293_v38 = vadd.f32 %v292_v37, %v214_v34 }
 0x29b   :  { %v302_v39 = vmax.f32 %v298_v36, 0.0 }
 0x29c   :  { %v301_v40 = vmax.f32 %v293_v38, 0.0 }
 0x29e   :  { %v457_v41 = vpack.c.bf16 %v302_v39, %v301_v40 }
 0x2a0   :  { %458 = vmatpush3.bf16.msra.mxu1 %v457_v41 }
 0x2a3   :  { %446 = vmatmul.mubr.msk.f32.vlgmr.msra.gmra.mrb[2].mxu1 %vm30_vm0, %v303_v42 }
 0x376   :  { %v379_v44 = vpop.f32.mrb[2].mxu1 }
 0x377   :  { %v380_v45 = vadd.f32 %v379_v44, %v308_v43  ;;  %v447_v46 = vpop.f32.mrb[3].mxu1 }
 0x379   :  { %v383_v47 = vmax.f32 %v380_v45, 0.0 }
 0x37b   :  { %385 = vst.msk [vmem:[#allocation2] sm:$0xff] %vm384_vm2, %v383_v47 }
 0x37c   :  { %484 = shalt.err (!%p481_p4)
}
 0x37d   :  { %s485_s7 = scalar_lea.hbm %s579_s3, 128 }
 0x37e   :  { %p486_p5 = scmp.ne.s32.totalorder %s579_s3, %s485_s7  ;;  %p489_p6 = scmp.lt.u32.totalorder %s485_s7, %s579_s3 }
 0x380   :  { %p491_p7 = pnand %p489_p6, %p486_p5 }
 0x382   :  { %494 = shalt.err (!%p491_p7)
}
 0x383   :  { %395 = dma.vmem_to_hbm [thread:$0]  %s393_s4, 128, %s579_s3, [#allocation3]  }
 0x384   :  { %495 = dma.done.wait [#allocation3], 128  }
 0x385   :  { %496 = vsyncadd [#allocation3], 4294967168 }
 0x386   :  { %399 = vsyncpa [#allocation3], 1 }

</bundles_post_ra>
